<compile_context>
chip_gen: v5e
topology: v5e:2x2
jax: 0.10.0
libtpu: 0.0.40
codegen_flags: <defaults>
</compile_context>

<pallas_src>
import jax
import jax.numpy as jnp
from jax.experimental import pallas as pl
from jax.experimental.pallas import tpu as pltpu


# ----------------------------------------------------------------------------
# Kernel: both Q-network MLPs on one batch tile.
#   (Linear -> ReLU) x3 -> Linear(hidden -> 1), twice (net 0 and net 1).
# ----------------------------------------------------------------------------
def _double_q_kernel(x_ref, w1_ref, w2_ref, w3_ref, w4_ref, bias_ref, out_ref):
    x = x_ref[...]                      # (tb, in_dim) bf16, pre-cast in wrapper
    biases = bias_ref[...]              # (2, 4, H) f32

    ys = []
    for n in range(2):                  # static unroll over the two nets
        b = biases[n]                   # (4, H)

        h = jnp.dot(x, w1_ref[n], preferred_element_type=jnp.float32) + b[0:1, :]
        h = jnp.maximum(h, 0.0)

        h = jnp.dot(h.astype(jnp.bfloat16), w2_ref[n],
                    preferred_element_type=jnp.float32) + b[1:2, :]
        h = jnp.maximum(h, 0.0)

        h = jnp.dot(h.astype(jnp.bfloat16), w3_ref[n],
                    preferred_element_type=jnp.float32) + b[2:3, :]
        h = jnp.maximum(h, 0.0)

        # final hidden -> 1 on the MXU (it is idle here); b4 lives broadcast in
        # bias row 3, only column 0 is needed.
        y = jnp.dot(h.astype(jnp.bfloat16), w4_ref[n],
                    preferred_element_type=jnp.float32) + b[3:4, 0:1]
        ys.append(y)

    out_ref[...] = jnp.concatenate(ys, axis=1).astype(out_ref.dtype)


# ----------------------------------------------------------------------------
# Wrapper: one pallas_call computes both Q values.
# ----------------------------------------------------------------------------
def double_q_forward(state, action, params):
    w1, w2, w3, w4, biases = params
    B = state.shape[0]
    in_dim = w1.shape[1]
    H = w1.shape[2]

    # pre-concatenate + pre-cast the layer-1 input (negligible XLA op).
    x = jnp.concatenate([state, action], axis=1).astype(jnp.bfloat16)

    # batch tiling: big tiles amortize per-step overhead; VMEM has huge
    # headroom at these sizes on every TPU generation.
    tb = B if B <= 1024 else 1024
    nb = pl.cdiv(B, tb)

    def full_spec(arr):
        # whole (stacked) parameter, resident across all batch tiles
        return pl.BlockSpec(arr.shape, lambda b: (0,) * arr.ndim)

    out = pl.pallas_call(
        _double_q_kernel,
        grid=(nb,),
        in_specs=[pl.BlockSpec((tb, in_dim), lambda b: (b, 0)),   # x
                  full_spec(w1), full_spec(w2), full_spec(w3),
                  full_spec(w4), full_spec(biases)],
        out_specs=pl.BlockSpec((tb, 2), lambda b: (b, 0)),
        out_shape=jax.ShapeDtypeStruct((B, 2), jnp.float32),
        compiler_params=pltpu.CompilerParams(
            dimension_semantics=("parallel",)),
    )(x, w1, w2, w3, w4, biases)

    return out[:, 0:1], out[:, 1:2]


# ----------------------------------------------------------------------------
# Parameter init (mimics PyTorch nn.Linear default U(-1/sqrt(fan_in), +)).
# Weights stored (in, out) so y = x @ W + b.
# ----------------------------------------------------------------------------
def init_linear(key, fan_in, fan_out):
    kw, kb = jax.random.split(key)
    bound = 1.0 / float(fan_in) ** 0.5
    w = jax.random.uniform(kw, (fan_in, fan_out), jnp.float32, -bound, bound)
    b = jax.random.uniform(kb, (1, fan_out), jnp.float32, -bound, bound)
    return w, b


def init_mlp_params(key, input_dim, output_dim, hidden_size=256):
    k1, k2, k3, k4 = jax.random.split(key, 4)
    w1, b1 = init_linear(k1, input_dim, hidden_size)
    w2, b2 = init_linear(k2, hidden_size, hidden_size)
    w3, b3 = init_linear(k3, hidden_size, hidden_size)
    w4, b4 = init_linear(k4, hidden_size, output_dim)
    return (w1, b1, w2, b2, w3, b3, w4, b4)


class DoubleQFunc:
    """JAX/Pallas port of the PyTorch DoubleQFunc module (fused twin nets)."""

    def __init__(self, key, state_dim, action_dim, hidden_size=256):
        k1, k2 = jax.random.split(key)
        in_dim = state_dim + action_dim
        H = hidden_size
        p1 = init_mlp_params(k1, in_dim, 1, H)
        p2 = init_mlp_params(k2, in_dim, 1, H)

        def stack(a, b):
            return jnp.stack([a, b], axis=0)

        w1_1, b1_1, w2_1, b2_1, w3_1, b3_1, w4_1, b4_1 = p1
        w1_2, b1_2, w2_2, b2_2, w3_2, b3_2, w4_2, b4_2 = p2

        def pack_bias(b1, b2, b3, b4):
            # rows: b1, b2, b3, b4 broadcast across the hidden width
            return jnp.concatenate(
                [b1, b2, b3, jnp.broadcast_to(b4, (1, H))], axis=0)   # (4, H)

        bf16 = jnp.bfloat16
        self.params = (
            stack(w1_1, w1_2).astype(bf16),                           # w1 (2, in, H)
            stack(w2_1, w2_2).astype(bf16),                           # w2 (2, H, H)
            stack(w3_1, w3_2).astype(bf16),                           # w3 (2, H, H)
            stack(w4_1, w4_2).astype(bf16),                           # w4 (2, H, 1)
            stack(pack_bias(b1_1, b2_1, b3_1, b4_1),
                  pack_bias(b1_2, b2_2, b3_2, b4_2)),                 # (2, 4, H) f32
        )

    def __call__(self, state, action):
        return double_q_forward(state, action, self.params)


# ----------------------------------------------------------------------------
# Pure-JAX reference (same bf16 weight values, f32 math) for the self-test.
# ----------------------------------------------------------------------------
def _reference(state, action, params):
    w1, w2, w3, w4, biases = params
    x = jnp.concatenate([state, action], axis=1)
    outs = []
    for n in range(2):
        b = biases[n]
        h = jnp.maximum(x @ w1[n].astype(jnp.float32) + b[0:1, :], 0.0)
        h = jnp.maximum(h @ w2[n].astype(jnp.float32) + b[1:2, :], 0.0)
        h = jnp.maximum(h @ w3[n].astype(jnp.float32) + b[2:3, :], 0.0)
        y = h @ w4[n].astype(jnp.float32) + b[3:4, 0:1]
        outs.append(y)
    return outs[0], outs[1]


if __name__ == "__main__":
    key = jax.random.PRNGKey(0)
    k_params, k_state, k_action = jax.random.split(key, 3)

    batch = 8
    state_dim = 10
    action_dim = 2
    hidden = 256

    qfunc = DoubleQFunc(k_params, state_dim, action_dim, hidden_size=hidden)

    state = jax.random.normal(k_state, (batch, state_dim), jnp.float32)
    action = jax.random.normal(k_action, (batch, action_dim), jnp.float32)

    q1, q2 = qfunc(state, action)
    q1 = jax.block_until_ready(q1)
    q2 = jax.block_until_ready(q2)

    r1, r2 = _reference(state, action, qfunc.params)
    assert q1.shape == (batch, 1) and q2.shape == (batch, 1)
    # bf16 activations/weights on the MXU vs f32 reference -> looser tolerance
    assert jnp.allclose(q1, r1, atol=2e-2, rtol=2e-2)
    assert jnp.allclose(q2, r2, atol=2e-2, rtol=2e-2)

    print("KERNEL_OK")
</pallas_src>

<mosaic_0001>
module attributes {stable_mosaic.version = 11 : i64} {
  func.func @_double_q_kernel(%arg0: i32, %arg1: memref<8x12xbf16, #tpu.memory_space<vmem>>, %arg2: memref<2x12x256xbf16, #tpu.memory_space<vmem>>, %arg3: memref<2x256x256xbf16, #tpu.memory_space<vmem>>, %arg4: memref<2x256x256xbf16, #tpu.memory_space<vmem>>, %arg5: memref<2x256x1xbf16, #tpu.memory_space<vmem>>, %arg6: memref<2x4x256xf32, #tpu.memory_space<vmem>>, %arg7: memref<8x2xf32, #tpu.memory_space<vmem>>) attributes {dimension_semantics = [#tpu.dimension_semantics<parallel>], iteration_bounds = array<i64: 1>, scalar_prefetch = 0 : i64, scratch_operands = 0 : i64, tpu.core_type = #tpu.core_type<tc>, window_params = [{transform_indices = @transform_0, window_bounds = array<i64: 8, 12>}, {pipeline_mode = #tpu.pipeline_mode<synchronous>, transform_indices = @transform_1, window_bounds = array<i64: 2, 12, 256>}, {pipeline_mode = #tpu.pipeline_mode<synchronous>, transform_indices = @transform_2, window_bounds = array<i64: 2, 256, 256>}, {pipeline_mode = #tpu.pipeline_mode<synchronous>, transform_indices = @transform_3, window_bounds = array<i64: 2, 256, 256>}, {pipeline_mode = #tpu.pipeline_mode<synchronous>, transform_indices = @transform_4, window_bounds = array<i64: 2, 256, 1>}, {pipeline_mode = #tpu.pipeline_mode<synchronous>, transform_indices = @transform_5, window_bounds = array<i64: 2, 4, 256>}, {transform_indices = @transform_6, window_bounds = array<i64: 8, 2>}]} {
    %c0 = arith.constant 0 : index
    %c0_0 = arith.constant 0 : index
    %0 = vector.load %arg1[%c0, %c0_0] : memref<8x12xbf16, #tpu.memory_space<vmem>>, vector<8x12xbf16>
    %c0_1 = arith.constant 0 : index
    %c0_2 = arith.constant 0 : index
    %c0_3 = arith.constant 0 : index
    %1 = vector.load %arg6[%c0_1, %c0_2, %c0_3] : memref<2x4x256xf32, #tpu.memory_space<vmem>>, vector<2x4x256xf32>
    %2 = vector.extract_strided_slice %1 {offsets = [0, 0, 0], sizes = [1, 4, 256], strides = [1, 1, 1]} : vector<2x4x256xf32> to vector<1x4x256xf32>
    %3 = vector.shape_cast %2 : vector<1x4x256xf32> to vector<4x256xf32>
    %c0_4 = arith.constant 0 : index
    %c0_5 = arith.constant 0 : index
    %c0_6 = arith.constant 0 : index
    %4 = vector.load %arg2[%c0_4, %c0_5, %c0_6] : memref<2x12x256xbf16, #tpu.memory_space<vmem>>, vector<1x12x256xbf16>
    %5 = vector.shape_cast %4 : vector<1x12x256xbf16> to vector<12x256xbf16>
    %cst = arith.constant dense<0.000000e+00> : vector<8x256xf32>
    %6 = tpu.matmul %0, %5, %cst {dimension_numbers = #tpu.dot_dimension_numbers<[1], [0], [0], [1], [0, 0, 1, 1], [], []>} : vector<8x12xbf16>, vector<12x256xbf16>, vector<8x256xf32> -> vector<8x256xf32>
    %7 = vector.extract_strided_slice %3 {offsets = [0, 0], sizes = [1, 256], strides = [1, 1]} : vector<4x256xf32> to vector<1x256xf32>
    %8 = vector.broadcast %7 : vector<1x256xf32> to vector<8x256xf32>
    %9 = arith.addf %6, %8 : vector<8x256xf32>
    %cst_7 = arith.constant 0.000000e+00 : f32
    %10 = vector.broadcast %cst_7 : f32 to vector<8x256xf32>
    %11 = arith.maximumf %9, %10 : vector<8x256xf32>
    %12 = arith.truncf %11 : vector<8x256xf32> to vector<8x256xbf16>
    %c0_8 = arith.constant 0 : index
    %c0_9 = arith.constant 0 : index
    %c0_10 = arith.constant 0 : index
    %13 = vector.load %arg3[%c0_8, %c0_9, %c0_10] : memref<2x256x256xbf16, #tpu.memory_space<vmem>>, vector<1x256x256xbf16>
    %14 = vector.shape_cast %13 : vector<1x256x256xbf16> to vector<256x256xbf16>
    %cst_11 = arith.constant dense<0.000000e+00> : vector<8x256xf32>
    %15 = tpu.matmul %12, %14, %cst_11 {dimension_numbers = #tpu.dot_dimension_numbers<[1], [0], [0], [1], [0, 0, 1, 1], [], []>} : vector<8x256xbf16>, vector<256x256xbf16>, vector<8x256xf32> -> vector<8x256xf32>
    %16 = vector.extract_strided_slice %3 {offsets = [1, 0], sizes = [1, 256], strides = [1, 1]} : vector<4x256xf32> to vector<1x256xf32>
    %17 = vector.broadcast %16 : vector<1x256xf32> to vector<8x256xf32>
    %18 = arith.addf %15, %17 : vector<8x256xf32>
    %cst_12 = arith.constant 0.000000e+00 : f32
    %19 = vector.broadcast %cst_12 : f32 to vector<8x256xf32>
    %20 = arith.maximumf %18, %19 : vector<8x256xf32>
    %21 = arith.truncf %20 : vector<8x256xf32> to vector<8x256xbf16>
    %c0_13 = arith.constant 0 : index
    %c0_14 = arith.constant 0 : index
    %c0_15 = arith.constant 0 : index
    %22 = vector.load %arg4[%c0_13, %c0_14, %c0_15] : memref<2x256x256xbf16, #tpu.memory_space<vmem>>, vector<1x256x256xbf16>
    %23 = vector.shape_cast %22 : vector<1x256x256xbf16> to vector<256x256xbf16>
    %cst_16 = arith.constant dense<0.000000e+00> : vector<8x256xf32>
    %24 = tpu.matmul %21, %23, %cst_16 {dimension_numbers = #tpu.dot_dimension_numbers<[1], [0], [0], [1], [0, 0, 1, 1], [], []>} : vector<8x256xbf16>, vector<256x256xbf16>, vector<8x256xf32> -> vector<8x256xf32>
    %25 = vector.extract_strided_slice %3 {offsets = [2, 0], sizes = [1, 256], strides = [1, 1]} : vector<4x256xf32> to vector<1x256xf32>
    %26 = vector.broadcast %25 : vector<1x256xf32> to vector<8x256xf32>
    %27 = arith.addf %24, %26 : vector<8x256xf32>
    %cst_17 = arith.constant 0.000000e+00 : f32
    %28 = vector.broadcast %cst_17 : f32 to vector<8x256xf32>
    %29 = arith.maximumf %27, %28 : vector<8x256xf32>
    %30 = arith.truncf %29 : vector<8x256xf32> to vector<8x256xbf16>
    %c0_18 = arith.constant 0 : index
    %c0_19 = arith.constant 0 : index
    %c0_20 = arith.constant 0 : index
    %31 = vector.load %arg5[%c0_18, %c0_19, %c0_20] : memref<2x256x1xbf16, #tpu.memory_space<vmem>>, vector<1x256x1xbf16>
    %32 = vector.shape_cast %31 : vector<1x256x1xbf16> to vector<256x1xbf16>
    %cst_21 = arith.constant dense<0.000000e+00> : vector<8x1xf32>
    %33 = tpu.matmul %30, %32, %cst_21 {dimension_numbers = #tpu.dot_dimension_numbers<[1], [0], [0], [1], [0, 0, 1, 1], [], []>} : vector<8x256xbf16>, vector<256x1xbf16>, vector<8x1xf32> -> vector<8x1xf32>
    %34 = vector.extract_strided_slice %3 {offsets = [3, 0], sizes = [1, 1], strides = [1, 1]} : vector<4x256xf32> to vector<1x1xf32>
    %35 = vector.broadcast %34 : vector<1x1xf32> to vector<8x1xf32>
    %36 = arith.addf %33, %35 : vector<8x1xf32>
    %37 = vector.extract_strided_slice %1 {offsets = [1, 0, 0], sizes = [1, 4, 256], strides = [1, 1, 1]} : vector<2x4x256xf32> to vector<1x4x256xf32>
    %38 = vector.shape_cast %37 : vector<1x4x256xf32> to vector<4x256xf32>
    %c1 = arith.constant 1 : index
    %c0_22 = arith.constant 0 : index
    %c0_23 = arith.constant 0 : index
    %39 = vector.load %arg2[%c1, %c0_22, %c0_23] : memref<2x12x256xbf16, #tpu.memory_space<vmem>>, vector<1x12x256xbf16>
    %40 = vector.shape_cast %39 : vector<1x12x256xbf16> to vector<12x256xbf16>
    %cst_24 = arith.constant dense<0.000000e+00> : vector<8x256xf32>
    %41 = tpu.matmul %0, %40, %cst_24 {dimension_numbers = #tpu.dot_dimension_numbers<[1], [0], [0], [1], [0, 0, 1, 1], [], []>} : vector<8x12xbf16>, vector<12x256xbf16>, vector<8x256xf32> -> vector<8x256xf32>
    %42 = vector.extract_strided_slice %38 {offsets = [0, 0], sizes = [1, 256], strides = [1, 1]} : vector<4x256xf32> to vector<1x256xf32>
    %43 = vector.broadcast %42 : vector<1x256xf32> to vector<8x256xf32>
    %44 = arith.addf %41, %43 : vector<8x256xf32>
    %cst_25 = arith.constant 0.000000e+00 : f32
    %45 = vector.broadcast %cst_25 : f32 to vector<8x256xf32>
    %46 = arith.maximumf %44, %45 : vector<8x256xf32>
    %47 = arith.truncf %46 : vector<8x256xf32> to vector<8x256xbf16>
    %c1_26 = arith.constant 1 : index
    %c0_27 = arith.constant 0 : index
    %c0_28 = arith.constant 0 : index
    %48 = vector.load %arg3[%c1_26, %c0_27, %c0_28] : memref<2x256x256xbf16, #tpu.memory_space<vmem>>, vector<1x256x256xbf16>
    %49 = vector.shape_cast %48 : vector<1x256x256xbf16> to vector<256x256xbf16>
    %cst_29 = arith.constant dense<0.000000e+00> : vector<8x256xf32>
    %50 = tpu.matmul %47, %49, %cst_29 {dimension_numbers = #tpu.dot_dimension_numbers<[1], [0], [0], [1], [0, 0, 1, 1], [], []>} : vector<8x256xbf16>, vector<256x256xbf16>, vector<8x256xf32> -> vector<8x256xf32>
    %51 = vector.extract_strided_slice %38 {offsets = [1, 0], sizes = [1, 256], strides = [1, 1]} : vector<4x256xf32> to vector<1x256xf32>
    %52 = vector.broadcast %51 : vector<1x256xf32> to vector<8x256xf32>
    %53 = arith.addf %50, %52 : vector<8x256xf32>
    %cst_30 = arith.constant 0.000000e+00 : f32
    %54 = vector.broadcast %cst_30 : f32 to vector<8x256xf32>
    %55 = arith.maximumf %53, %54 : vector<8x256xf32>
    %56 = arith.truncf %55 : vector<8x256xf32> to vector<8x256xbf16>
    %c1_31 = arith.constant 1 : index
    %c0_32 = arith.constant 0 : index
    %c0_33 = arith.constant 0 : index
    %57 = vector.load %arg4[%c1_31, %c0_32, %c0_33] : memref<2x256x256xbf16, #tpu.memory_space<vmem>>, vector<1x256x256xbf16>
    %58 = vector.shape_cast %57 : vector<1x256x256xbf16> to vector<256x256xbf16>
    %cst_34 = arith.constant dense<0.000000e+00> : vector<8x256xf32>
    %59 = tpu.matmul %56, %58, %cst_34 {dimension_numbers = #tpu.dot_dimension_numbers<[1], [0], [0], [1], [0, 0, 1, 1], [], []>} : vector<8x256xbf16>, vector<256x256xbf16>, vector<8x256xf32> -> vector<8x256xf32>
    %60 = vector.extract_strided_slice %38 {offsets = [2, 0], sizes = [1, 256], strides = [1, 1]} : vector<4x256xf32> to vector<1x256xf32>
    %61 = vector.broadcast %60 : vector<1x256xf32> to vector<8x256xf32>
    %62 = arith.addf %59, %61 : vector<8x256xf32>
    %cst_35 = arith.constant 0.000000e+00 : f32
    %63 = vector.broadcast %cst_35 : f32 to vector<8x256xf32>
    %64 = arith.maximumf %62, %63 : vector<8x256xf32>
    %65 = arith.truncf %64 : vector<8x256xf32> to vector<8x256xbf16>
    %c1_36 = arith.constant 1 : index
    %c0_37 = arith.constant 0 : index
    %c0_38 = arith.constant 0 : index
    %66 = vector.load %arg5[%c1_36, %c0_37, %c0_38] : memref<2x256x1xbf16, #tpu.memory_space<vmem>>, vector<1x256x1xbf16>
    %67 = vector.shape_cast %66 : vector<1x256x1xbf16> to vector<256x1xbf16>
    %cst_39 = arith.constant dense<0.000000e+00> : vector<8x1xf32>
    %68 = tpu.matmul %65, %67, %cst_39 {dimension_numbers = #tpu.dot_dimension_numbers<[1], [0], [0], [1], [0, 0, 1, 1], [], []>} : vector<8x256xbf16>, vector<256x1xbf16>, vector<8x1xf32> -> vector<8x1xf32>
    %69 = vector.extract_strided_slice %38 {offsets = [3, 0], sizes = [1, 1], strides = [1, 1]} : vector<4x256xf32> to vector<1x1xf32>
    %70 = vector.broadcast %69 : vector<1x1xf32> to vector<8x1xf32>
    %71 = arith.addf %68, %70 : vector<8x1xf32>
    %72 = tpu.concatenate %36, %71 in 1 : vector<8x1xf32>, vector<8x1xf32> -> vector<8x2xf32>
    %c0_40 = arith.constant 0 : index
    %c0_41 = arith.constant 0 : index
    %73 = vector.load %arg7[%c0_40, %c0_41] : memref<8x2xf32, #tpu.memory_space<vmem>>, vector<8x2xf32>
    tpu.vector_store %arg7[%c0_40, %c0_41], %72 {strides = array<i32>} : memref<8x2xf32, #tpu.memory_space<vmem>>, vector<8x2xf32>,
    return
  }
  func.func @transform_0(%arg0: i32) -> (i32, i32) {
    %c0_i32 = arith.constant 0 : i32
    %c0_i32_0 = arith.constant 0 : i32
    return %arg0, %c0_i32 : i32, i32
  }
  func.func @transform_1(%arg0: i32) -> (i32, i32, i32) {
    %c0_i32 = arith.constant 0 : i32
    %c0_i32_0 = arith.constant 0 : i32
    %c0_i32_1 = arith.constant 0 : i32
    %c0_i32_2 = arith.constant 0 : i32
    return %c0_i32, %c0_i32_0, %c0_i32_1 : i32, i32, i32
  }
  func.func @transform_2(%arg0: i32) -> (i32, i32, i32) {
    %c0_i32 = arith.constant 0 : i32
    %c0_i32_0 = arith.constant 0 : i32
    %c0_i32_1 = arith.constant 0 : i32
    %c0_i32_2 = arith.constant 0 : i32
    return %c0_i32, %c0_i32_0, %c0_i32_1 : i32, i32, i32
  }
  func.func @transform_3(%arg0: i32) -> (i32, i32, i32) {
    %c0_i32 = arith.constant 0 : i32
    %c0_i32_0 = arith.constant 0 : i32
    %c0_i32_1 = arith.constant 0 : i32
    %c0_i32_2 = arith.constant 0 : i32
    return %c0_i32, %c0_i32_0, %c0_i32_1 : i32, i32, i32
  }
  func.func @transform_4(%arg0: i32) -> (i32, i32, i32) {
    %c0_i32 = arith.constant 0 : i32
    %c0_i32_0 = arith.constant 0 : i32
    %c0_i32_1 = arith.constant 0 : i32
    %c0_i32_2 = arith.constant 0 : i32
    return %c0_i32, %c0_i32_0, %c0_i32_1 : i32, i32, i32
  }
  func.func @transform_5(%arg0: i32) -> (i32, i32, i32) {
    %c0_i32 = arith.constant 0 : i32
    %c0_i32_0 = arith.constant 0 : i32
    %c0_i32_1 = arith.constant 0 : i32
    %c0_i32_2 = arith.constant 0 : i32
    return %c0_i32, %c0_i32_0, %c0_i32_1 : i32, i32, i32
  }
  func.func @transform_6(%arg0: i32) -> (i32, i32) {
    %c0_i32 = arith.constant 0 : i32
    %c0_i32_0 = arith.constant 0 : i32
    return %arg0, %c0_i32 : i32, i32
  }
}

</mosaic_0001>

<bundles_post_ra>
// kernel: tpu_custom_call.1
= control target key start
LH: loop header
LB: loop body
LE: loop exit
PB: predicated region body
PF: predicated region fallthrough
CT: control target
= control target key end

     0   :  { %11 = vsyncpa [#allocation3], 0  ;;  %s2642_s0 = inlined_call_operand.vmem [shape: bf16[8,12], index: 0, kind: input, shape index: {}]   ;;  %s2643_s1 = inlined_call_operand.vmem [shape: bf16[2,12,256], index: 1, kind: input, shape index: {}]   ;;  %s2644_s2 = inlined_call_operand.hbm [shape: bf16[2,256,256], index: 2, kind: input, shape index: {}]   ;;  %s2645_s3 = inlined_call_operand.hbm [shape: bf16[2,256,256], index: 3, kind: input, shape index: {}]   ;;  %s2646_s4 = inlined_call_operand.vmem [shape: bf16[2,256,1], index: 4, kind: input, shape index: {}]   ;;  %s2647_s5 = inlined_call_operand.vmem [shape: f32[2,4,256], index: 5, kind: input, shape index: {}]   ;;  %s2648_s6 = inlined_call_operand.vmem [shape: f32[8,2], index: 6, kind: output, shape index: {}]  }
   0x1   :  { %s21_s23 = sshll.u32 %s2644_s2, 4  ;;  %s22_s23 = int_to_ptr.hbm [resolvable:$true] %s21_s23 }
   0x2   :  { %12 = vsyncpa [#allocation5], 0  ;;  %s2429_s24 = smov [#allocation2]   ;;  %s34_s28 = sshll.u32 %s2645_s3, 4  ;;  %s35_s28 = int_to_ptr.hbm [resolvable:$true] %s34_s28 }
   0x3   :  { %s23_s25 = sshll.u32 %s2429_s24, 4  ;;  %s2430_s29 = smov 128   ;;  %s24_s25 = int_to_ptr.vmem [resolvable:$true] %s23_s25 }
   0x4   :  { %s2431_s30 = smov 8   ;;  %s2432_s7 = smov [#allocation4]  }
   0x5   :  { %29 = dma.hbm_to_vmem [thread:$0]  %s22_s23, 8192, %s24_s25, [#allocation3], %s2430_s29, %s2430_s29, %s2431_s30  }
   0x6   :  { %s36_s8 = sshll.u32 %s2432_s7, 4  ;;  %s37_s8 = int_to_ptr.vmem [resolvable:$true] %s36_s8 }
   0x7   :  { %42 = dma.hbm_to_vmem [thread:$0]  %s35_s28, 8192, %s37_s8, [#allocation5], %s2430_s29, %s2430_s29, %s2431_s30  }
   0x8   :  { %2425 = dma.done.wait [#allocation3], 8192  }
   0x9   :  { %2426 = vsyncadd [#allocation3], 4294959104 }
   0xa   :  { %2427 = dma.done.wait [#allocation5], 8192  }
   0xb   :  { %2428 = vsyncadd [#allocation5], 4294959104  ;;  %vm80_vm0 = vcmask 1045504   ;;  %v1516_v0 = vld [vmem:[%s2643_s1] sm:$0xf]  ;;  %vm76_vm1 = vcmask 97280  }
   0xc   :  { %v2209_v1 = vld [vmem:[%s2643_s1 + $0x4] sm:$0x30]  ;;  %v2208_v2 = vld [vmem:[%s2643_s1 + $0x4] sm:$0xf]  ;;  %v1518_v4 = vld [vmem:[%s2643_s1 + $0x8] sm:$0x30] }
   0xd   :  { %v1517_v3 = vor.u32 %v2209_v1, %v1516_v0  ;;  %v1582_v5 = vld [vmem:[#allocation2 + $0x70] sm:$0xf]  ;;  %v1521_v6 = vor.u32 %v2208_v2, %v1518_v4  ;;  %v2490_v7 = vld [vmem:[%s2642_s0] sm:$0xf]  ;;  %v2225_v8 = vld [vmem:[#allocation2 + $0x74] sm:$0xf0] }
   0xe   :  { %v1646_v9 = vld [vmem:[#allocation2 + $0xf0] sm:$0xf]  ;;  %v2241_v10 = vld [vmem:[#allocation2 + $0xf4] sm:$0xf0]  ;;  %v1583_v12 = vor.u32 %v2225_v8, %v1582_v5  ;;  %v2224_v14 = vld [vmem:[#allocation2 + $0x74] sm:$0xf] }
   0xf   :  { %v82_v11 = vsel %vm80_vm0, %v1517_v3, 0  ;;  %v1647_v13 = vor.u32 %v2241_v10, %v1646_v9  ;;  %v1584_v15 = vld [vmem:[#allocation2 + $0x78] sm:$0xf0]  ;;  %v85_v16 = vsel %vm80_vm0, %v1521_v6, 0  ;;  %v2240_v18 = vld [vmem:[#allocation2 + $0xf4] sm:$0xf] }
  0x10   :  { %94 = vmatpush.bf16.msra.mxu2 %v82_v11  ;;  %v1587_v17 = vor.u32 %v2224_v14, %v1584_v15  ;;  %v1648_v19 = vld [vmem:[#allocation2 + $0xf8] sm:$0xf0]  ;;  %107 = vmatpush.bf16.msra.mxu3 %v85_v16  ;;  %v1574_v21 = vld [vmem:[#allocation2 + $0x60] sm:$0xf]  ;;  %v2223_v22 = vld [vmem:[#allocation2 + $0x64] sm:$0xf0] }
  0x11   :  { %v1651_v20 = vor.u32 %v2240_v18, %v1648_v19  ;;  %v1638_v23 = vld [vmem:[#allocation2 + $0xe0] sm:$0xf]  ;;  %v1575_v24 = vor.u32 %v2223_v22, %v1574_v21  ;;  %v2239_v25 = vld [vmem:[#allocation2 + $0xe4] sm:$0xf0]  ;;  %v2222_v26 = vld [vmem:[#allocation2 + $0x64] sm:$0xf] }
  0x12   :  { %341 = vmatpush.bf16.msra.mxu0 %v1587_v17  ;;  %v1576_v27 = vld [vmem:[#allocation2 + $0x68] sm:$0xf0]  ;;  %v1639_v28 = vor.u32 %v2239_v25, %v1638_v23  ;;  %v2238_v30 = vld [vmem:[#allocation2 + $0xe4] sm:$0xf]  ;;  %v1566_v32 = vld [vmem:[#allocation2 + $0x50] sm:$0xf] }
  0x13   :  { %1522 = vmatmul.msk.bf16.vlgmr.msra.gmra.mxu2 %vm76_vm1, %v2490_v7  ;;  %354 = vmatpush.bf16.msra.mxu1 %v1651_v20  ;;  %v1579_v29 = vor.u32 %v2222_v26, %v1576_v27  ;;  %v1640_v31 = vld [vmem:[#allocation2 + $0xe8] sm:$0xf0]  ;;  %v2221_v34 = vld [vmem:[#allocation2 + $0x54] sm:$0xf0]  ;;  %v1630_v35 = vld [vmem:[#allocation2 + $0xd0] sm:$0xf] }
  0x14   :  { %315 = vmatpush.bf16.msrb.mxu2 %v1583_v12  ;;  %328 = vmatpush.bf16.msrb.mxu3 %v1647_v13  ;;  %v1643_v33 = vor.u32 %v2238_v30, %v1640_v31  ;;  %v2237_v36 = vld [vmem:[#allocation2 + $0xd4] sm:$0xf0]  ;;  %v1567_v37 = vor.u32 %v2221_v34, %v1566_v32  ;;  %v2220_v38 = vld [vmem:[#allocation2 + $0x54] sm:$0xf]  ;;  %v1568_v39 = vld [vmem:[#allocation2 + $0x58] sm:$0xf0] }
  0x15   :  { %1523 = vmatmul.msk.bf16.vlgmr.msra.gmra.mxu3 %vm76_vm1, %v2490_v7  ;;  %v2236_v40 = vld [vmem:[#allocation2 + $0xd4] sm:$0xf]  ;;  %v1631_v41 = vor.u32 %v2237_v36, %v1630_v35  ;;  %v1571_v42 = vor.u32 %v2220_v38, %v1568_v39  ;;  %v1632_v43 = vld [vmem:[#allocation2 + $0xd8] sm:$0xf0]  ;;  %v1558_v44 = vld [vmem:[#allocation2 + $0x40] sm:$0xf] }
  0x16   :  { %342 = vmatpush.bf16.msra.mxu0 %v1579_v29  ;;  %v2219_v45 = vld [vmem:[#allocation2 + $0x44] sm:$0xf0]  ;;  %v1635_v46 = vor.u32 %v2236_v40, %v1632_v43  ;;  %v1622_v47 = vld [vmem:[#allocation2 + $0xc0] sm:$0xf]  ;;  %v2218_v49 = vld [vmem:[#allocation2 + $0x44] sm:$0xf] }
  0x17   :  { %355 = vmatpush.bf16.msra.mxu1 %v1643_v33  ;;  %v2235_v48 = vld [vmem:[#allocation2 + $0xc4] sm:$0xf0]  ;;  %v1560_v50 = vld [vmem:[#allocation2 + $0x48] sm:$0xf0]  ;;  %v2234_v51 = vld [vmem:[#allocation2 + $0xc4] sm:$0xf]  ;;  %v1559_v53 = vor.u32 %v2219_v45, %v1558_v44 }
  0x18   :  { %316 = vmatpush.bf16.msrb.mxu2 %v1575_v24  ;;  %329 = vmatpush.bf16.msrb.mxu3 %v1639_v28  ;;  %v1624_v52 = vld [vmem:[#allocation2 + $0xc8] sm:$0xf0]  ;;  %v1623_v54 = vor.u32 %v2235_v48, %v1622_v47  ;;  %v1563_v55 = vor.u32 %v2218_v49, %v1560_v50  ;;  %v1550_v56 = vld [vmem:[#allocation2 + $0x30] sm:$0xf]  ;;  %v2217_v57 = vld [vmem:[#allocation2 + $0x34] sm:$0xf0] }
  0x19   :  { %v1614_v58 = vld [vmem:[#allocation2 + $0xb0] sm:$0xf]  ;;  %v1627_v59 = vor.u32 %v2234_v51, %v1624_v52  ;;  %v2233_v60 = vld [vmem:[#allocation2 + $0xb4] sm:$0xf0]  ;;  %v2216_v61 = vld [vmem:[#allocation2 + $0x34] sm:$0xf]  ;;  %v1551_v1 = vor.u32 %v2217_v57, %v1550_v56 }
  0x1a   :  { %343 = vmatpush.bf16.msra.mxu0 %v1571_v42  ;;  %v1552_v62 = vld [vmem:[#allocation2 + $0x38] sm:$0xf0]  ;;  %v2232_v63 = vld [vmem:[#allocation2 + $0xb4] sm:$0xf]  ;;  %v1615_v2 = vor.u32 %v2233_v60, %v1614_v58  ;;  %v1542_v4 = vld [vmem:[#allocation2 + $0x20] sm:$0xf] }
  0x1b   :  { %356 = vmatpush.bf16.msra.mxu1 %v1635_v46  ;;  %v1616_v0 = vld [vmem:[#allocation2 + $0xb8] sm:$0xf0]  ;;  %v1555_v3 = vor.u32 %v2216_v61, %v1552_v62  ;;  %v2215_v5 = vld [vmem:[#allocation2 + $0x24] sm:$0xf0]  ;;  %v1606_v6 = vld [vmem:[#allocation2 + $0xa0] sm:$0xf] }
  0x1c   :  { %317 = vmatpush.bf16.msrb.mxu2 %v1567_v37  ;;  %330 = vmatpush.bf16.msrb.mxu3 %v1631_v41  ;;  %v1619_v8 = vor.u32 %v2232_v63, %v1616_v0  ;;  %v2231_v9 = vld [vmem:[#allocation2 + $0xa4] sm:$0xf0]  ;;  %v2214_v10 = vld [vmem:[#allocation2 + $0x24] sm:$0xf]  ;;  %v1544_v11 = vld [vmem:[#allocation2 + $0x28] sm:$0xf0]  ;;  %v1543_v14 = vor.u32 %v2215_v5, %v1542_v4 }
  0x1d   :  { %v2230_v12 = vld [vmem:[#allocation2 + $0xa4] sm:$0xf]  ;;  %v1608_v13 = vld [vmem:[#allocation2 + $0xa8] sm:$0xf0]  ;;  %v1607_v15 = vor.u32 %v2231_v9, %v1606_v6  ;;  %v1547_v16 = vor.u32 %v2214_v10, %v1544_v11  ;;  %v1534_v18 = vld [vmem:[#allocation2 + $0x10] sm:$0xf] }
  0x1e   :  { %344 = vmatpush.bf16.msra.mxu0 %v1563_v55  ;;  %v1611_v17 = vor.u32 %v2230_v12, %v1608_v13  ;;  %v2213_v19 = vld [vmem:[#allocation2 + $0x14] sm:$0xf0]  ;;  %v1598_v21 = vld [vmem:[#allocation2 + $0x90] sm:$0xf]  ;;  %v2212_v23 = vld [vmem:[#allocation2 + $0x14] sm:$0xf] }
  0x1f   :  { %357 = vmatpush.bf16.msra.mxu1 %v1627_v59  ;;  %v1535_v20 = vor.u32 %v2213_v19, %v1534_v18  ;;  %v2229_v22 = vld [vmem:[#allocation2 + $0x94] sm:$0xf0]  ;;  %v1536_v25 = vld [vmem:[#allocation2 + $0x18] sm:$0xf0]  ;;  %v2228_v26 = vld [vmem:[#allocation2 + $0x94] sm:$0xf] }
  0x20   :  { %318 = vmatpush.bf16.msrb.mxu2 %v1559_v53  ;;  %331 = vmatpush.bf16.msrb.mxu3 %v1623_v54  ;;  %v1599_v24 = vor.u32 %v2229_v22, %v1598_v21  ;;  %v1539_v27 = vor.u32 %v2212_v23, %v1536_v25  ;;  %v1600_v28 = vld [vmem:[#allocation2 + $0x98] sm:$0xf0]  ;;  %v1526_v30 = vld [vmem:[#allocation2] sm:$0xf]  ;;  %v2211_v31 = vld [vmem:[#allocation2 + $0x4] sm:$0xf0] }
  0x21   :  { %v1603_v29 = vor.u32 %v2228_v26, %v1600_v28  ;;  %v1590_v32 = vld [vmem:[#allocation2 + $0x80] sm:$0xf]  ;;  %v1527_v33 = vor.u32 %v2211_v31, %v1526_v30  ;;  %v2227_v34 = vld [vmem:[#allocation2 + $0x84] sm:$0xf0]  ;;  %v2210_v35 = vld [vmem:[#allocation2 + $0x4] sm:$0xf] }
  0x22   :  { %345 = vmatpush.bf16.msra.mxu0 %v1555_v3  ;;  %v1528_v36 = vld [vmem:[#allocation2 + $0x8] sm:$0xf0]  ;;  %v1591_v37 = vor.u32 %v2227_v34, %v1590_v32  ;;  %v2226_v39 = vld [vmem:[#allocation2 + $0x84] sm:$0xf]  ;;  %v1774_v42 = vld [vmem:[#allocation4 + $0xf0] sm:$0xf] }
  0x23   :  { %358 = vmatpush.bf16.msra.mxu1 %v1619_v8  ;;  %v1531_v38 = vor.u32 %v2210_v35, %v1528_v36  ;;  %v1592_v40 = vld [vmem:[#allocation2 + $0x88] sm:$0xf0]  ;;  %v2273_v43 = vld [vmem:[#allocation4 + $0xf4] sm:$0xf0]  ;;  %v2272_v44 = vld [vmem:[#allocation4 + $0xf4] sm:$0xf] }
  0x24   :  { %319 = vmatpush.bf16.msrb.mxu2 %v1551_v1  ;;  %332 = vmatpush.bf16.msrb.mxu3 %v1615_v2  ;;  %v1595_v41 = vor.u32 %v2226_v39, %v1592_v40  ;;  %v1775_v45 = vor.u32 %v2273_v43, %v1774_v42  ;;  %v1776_v46 = vld [vmem:[#allocation4 + $0xf8] sm:$0xf0]  ;;  %v1766_v47 = vld [vmem:[#allocation4 + $0xe0] sm:$0xf]  ;;  %v2271_v48 = vld [vmem:[#allocation4 + $0xe4] sm:$0xf0] }
  0x25   :  { %v1779_v49 = vor.u32 %v2272_v44, %v1776_v46  ;;  %v2270_v50 = vld [vmem:[#allocation4 + $0xe4] sm:$0xf]  ;;  %v1768_v51 = vld [vmem:[#allocation4 + $0xe8] sm:$0xf0]  ;;  %v1710_v52 = vld [vmem:[#allocation4 + $0x70] sm:$0xf]  ;;  %v1767_v53 = vor.u32 %v2271_v48, %v1766_v47 }
  0x26   :  { %346 = vmatpush.bf16.msra.mxu0 %v1547_v16  ;;  %v2257_v54 = vld [vmem:[#allocation4 + $0x74] sm:$0xf0]  ;;  %v2256_v55 = vld [vmem:[#allocation4 + $0x74] sm:$0xf]  ;;  %v1712_v56 = vld [vmem:[#allocation4 + $0x78] sm:$0xf0]  ;;  %v1771_v57 = vor.u32 %v2270_v50, %v1768_v51 }
  0x27   :  { %359 = vmatpush.bf16.msra.mxu1 %v1611_v17  ;;  %v1711_v58 = vor.u32 %v2257_v54, %v1710_v52  ;;  %v1715_v59 = vor.u32 %v2256_v55, %v1712_v56  ;;  %v1758_v60 = vld [vmem:[#allocation4 + $0xd0] sm:$0xf]  ;;  %v2269_v61 = vld [vmem:[#allocation4 + $0xd4] sm:$0xf0]  ;;  %v2268_v62 = vld [vmem:[#allocation4 + $0xd4] sm:$0xf] }
  0x28   :  { %320 = vmatpush.bf16.msrb.mxu2 %v1543_v14  ;;  %333 = vmatpush.bf16.msrb.mxu3 %v1607_v15  ;;  %v1760_v63 = vld [vmem:[#allocation4 + $0xd8] sm:$0xf0]  ;;  %v1702_v0 = vld [vmem:[#allocation4 + $0x60] sm:$0xf]  ;;  %v2255_v1 = vld [vmem:[#allocation4 + $0x64] sm:$0xf0]  ;;  %v1759_v5 = vor.u32 %v2269_v61, %v1758_v60 }
  0x29   :  { %v1703_v2 = vor.u32 %v2255_v1, %v1702_v0  ;;  %v2254_v3 = vld [vmem:[#allocation4 + $0x64] sm:$0xf]  ;;  %v1704_v4 = vld [vmem:[#allocation4 + $0x68] sm:$0xf0]  ;;  %v1750_v8 = vld [vmem:[#allocation4 + $0xc0] sm:$0xf]  ;;  %v1763_v10 = vor.u32 %v2268_v62, %v1760_v63 }
  0x2a   :  { %347 = vmatpush.bf16.msra.mxu0 %v1539_v27  ;;  %v1707_v6 = vor.u32 %v2254_v3, %v1704_v4  ;;  %v2267_v9 = vld [vmem:[#allocation4 + $0xc4] sm:$0xf0]  ;;  %v1694_v11 = vld [vmem:[#allocation4 + $0x50] sm:$0xf]  ;;  %v2253_v12 = vld [vmem:[#allocation4 + $0x54] sm:$0xf0] }
  0x2b   :  { %360 = vmatpush.bf16.msra.mxu1 %v1603_v29  ;;  %v2252_v13 = vld [vmem:[#allocation4 + $0x54] sm:$0xf]  ;;  %v2266_v14 = vld [vmem:[#allocation4 + $0xc4] sm:$0xf]  ;;  %v1752_v15 = vld [vmem:[#allocation4 + $0xc8] sm:$0xf0]  ;;  %v1695_v17 = vor.u32 %v2253_v12, %v1694_v11 }
  0x2c   :  { %321 = vmatpush.bf16.msrb.mxu2 %v1535_v20  ;;  %334 = vmatpush.bf16.msrb.mxu3 %v1599_v24  ;;  %v1696_v16 = vld [vmem:[#allocation4 + $0x58] sm:$0xf0]  ;;  %v1686_v19 = vld [vmem:[#allocation4 + $0x40] sm:$0xf]  ;;  %v1751_v20 = vor.u32 %v2267_v9, %v1750_v8  ;;  %v2251_v21 = vld [vmem:[#allocation4 + $0x44] sm:$0xf0]  ;;  %v1755_v24 = vor.u32 %v2266_v14, %v1752_v15 }
  0x2d   :  { %v1699_v18 = vor.u32 %v2252_v13, %v1696_v16  ;;  %v2250_v22 = vld [vmem:[#allocation4 + $0x44] sm:$0xf]  ;;  %v1688_v23 = vld [vmem:[#allocation4 + $0x48] sm:$0xf0]  ;;  %v1742_v25 = vld [vmem:[#allocation4 + $0xb0] sm:$0xf]  ;;  %v1687_v30 = vor.u32 %v2251_v21, %v1686_v19 }
  0x2e   :  { %348 = vmatpush.bf16.msra.mxu0 %v1531_v38  ;;  %v2265_v26 = vld [vmem:[#allocation4 + $0xb4] sm:$0xf0]  ;;  %v2501_v27 = vld [vmem:[%s2647_s5] sm:$0xff]  ;;  %v2264_v28 = vld [vmem:[#allocation4 + $0xb4] sm:$0xf]  ;;  %v1691_v31 = vor.u32 %v2250_v22, %v1688_v23  ;;  %vm1504_vm2 = vcmask 7168  }
  0x2f   :  { %361 = vmatpush.bf16.msra.mxu1 %v1595_v41  ;;  %v1744_v29 = vld [vmem:[#allocation4 + $0xb8] sm:$0xf0]  ;;  %v1743_v32 = vor.u32 %v2265_v26, %v1742_v25  ;;  %v1734_v35 = vld [vmem:[#allocation4 + $0xa0] sm:$0xf]  ;;  %v2263_v36 = vld [vmem:[#allocation4 + $0xa4] sm:$0xf0] }
  0x30   :  { %322 = vmatpush.bf16.msrb.mxu2 %v1527_v33  ;;  %335 = vmatpush.bf16.msrb.mxu3 %v1591_v37  ;;  %v62_v33 = vperm.slane %v2501_v27, 0  ;;  %v1747_v34 = vor.u32 %v2264_v28, %v1744_v29  ;;  %v63_v37 = vperm.slane %v2501_v27, 4  ;;  %v2262_v38 = vld [vmem:[#allocation4 + $0xa4] sm:$0xf]  ;;  %v1736_v39 = vld [vmem:[#allocation4 + $0xa8] sm:$0xf0]  ;;  %v1735_v40 = vor.u32 %v2263_v36, %v1734_v35 }
  0x31   :  { %v1739_v42 = vor.u32 %v2262_v38, %v1736_v39  ;;  %v1678_v54 = vld [vmem:[#allocation4 + $0x30] sm:$0xf]  ;;  %v2249_v55 = vld [vmem:[#allocation4 + $0x34] sm:$0xf0]  ;;  %v2248_v56 = vld [vmem:[#allocation4 + $0x34] sm:$0xf] }
  0x32   :  { %595 = vmatpush.bf16.msrb.mxu0 %v1715_v59  ;;  %v66_v41 = vperm.slane %v62_v33, 0  ;;  %v67_v43 = vperm.slane %v63_v37, 0  ;;  %v1726_v60 = vld [vmem:[#allocation4 + $0x90] sm:$0xf]  ;;  %v2261_v61 = vld [vmem:[#allocation4 + $0x94] sm:$0xf0] }
  0x33   :  { %608 = vmatpush.bf16.msrb.mxu1 %v1779_v49  ;;  %v2260_v62 = vld [vmem:[#allocation4 + $0x94] sm:$0xf]  ;;  %v1727_v63 = vor.u32 %v2261_v61, %v1726_v60  ;;  %v1728_v0 = vld [vmem:[#allocation4 + $0x98] sm:$0xf0]  ;;  %v2247_v3 = vld [vmem:[#allocation4 + $0x24] sm:$0xf0] }
  0x34   :  { %582 = vmatpush.bf16.msra.mxu3 %v1775_v45  ;;  %569 = vmatpush.bf16.msra.mxu2 %v1711_v58  ;;  %v1680_v58 = vld [vmem:[#allocation4 + $0x38] sm:$0xf0]  ;;  %v1731_v1 = vor.u32 %v2260_v62, %v1728_v0  ;;  %v2246_v4 = vld [vmem:[#allocation4 + $0x24] sm:$0xf]  ;;  %v1718_v9 = vld [vmem:[#allocation4 + $0x80] sm:$0xf] }
  0x35   :  { %v1683_v59 = vor.u32 %v2248_v56, %v1680_v58  ;;  %v2258_v12 = vld [vmem:[#allocation4 + $0x84] sm:$0xf]  ;;  %v1720_v13 = vld [vmem:[#allocation4 + $0x88] sm:$0xf0]  ;;  %v1662_v15 = vld [vmem:[#allocation4 + $0x10] sm:$0xf] }
  0x36   :  { %596 = vmatpush.bf16.msrb.mxu0 %v1707_v6  ;;  %v1672_v6 = vld [vmem:[#allocation4 + $0x28] sm:$0xf0]  ;;  %v1723_v14 = vor.u32 %v2258_v12, %v1720_v13  ;;  %v2245_v16 = vld [vmem:[#allocation4 + $0x14] sm:$0xf0]  ;;  %v1664_v19 = vld [vmem:[#allocation4 + $0x18] sm:$0xf0] }
  0x37   :  { %609 = vmatpush.bf16.msrb.mxu1 %v1771_v57  ;;  %v1679_v57 = vor.u32 %v2249_v55, %v1678_v54  ;;  %v1675_v8 = vor.u32 %v2246_v4, %v1672_v6  ;;  %v1654_v21 = vld [vmem:[#allocation4] sm:$0xf]  ;;  %v2243_v22 = vld [vmem:[#allocation4 + $0x4] sm:$0xf0]  ;;  %v2242_v23 = vld [vmem:[#allocation4 + $0x4] sm:$0xf] }
  0x38   :  { %583 = vmatpush.bf16.msra.mxu3 %v1767_v53  ;;  %570 = vmatpush.bf16.msra.mxu2 %v1703_v2  ;;  %v1670_v2 = vld [vmem:[#allocation4 + $0x20] sm:$0xf]  ;;  %v1656_v25 = vld [vmem:[#allocation4 + $0x8] sm:$0xf0]  ;;  %v1848_v28 = vld [vmem:[%s2643_s1 + $0x10] sm:$0xf] }
  0x39   :  { %v1659_v26 = vor.u32 %v2242_v23, %v1656_v25  ;;  %v2291_v29 = vld [vmem:[%s2643_s1 + $0x14] sm:$0x30]  ;;  %v150_v36 = vperm.slane %v2501_v27, 5  ;;  %v149_v38 = vperm.slane %v2501_v27, 1  ;;  %v1914_v58 = vld [vmem:[#allocation2 + $0x170] sm:$0xf] }
  0x3a   :  { %597 = vmatpush.bf16.msrb.mxu0 %v1699_v18  ;;  %v2244_v18 = vld [vmem:[#allocation4 + $0x14] sm:$0xf]  ;;  %v2289_v39 = vld [vmem:[%s2646_s4 + $0x78] sm:$0xff]  ;;  %v2286_v60 = vld [vmem:[%s2646_s4 + $0x60] sm:$0xff]  ;;  %vm1506_vm3 = vcmask 15360  }
  0x3b   :  { %610 = vmatpush.bf16.msrb.mxu1 %v1763_v10  ;;  %v2259_v10 = vld [vmem:[#allocation4 + $0x84] sm:$0xf0]  ;;  %v154_v37 = vperm.slane %v150_v36, 1  ;;  %v2278_v61 = vld [vmem:[%s2646_s4 + $0x20] sm:$0xff]  ;;  %v2276_v6 = vld [vmem:[%s2646_s4 + $0x10] sm:$0xff] }
  0x3c   :  { %584 = vmatpush.bf16.msra.mxu3 %v1759_v5  ;;  %571 = vmatpush.bf16.msra.mxu2 %v1695_v17  ;;  %v1671_v5 = vor.u32 %v2247_v3, %v1670_v2  ;;  %v1719_v11 = vor.u32 %v2259_v10, %v1718_v9  ;;  %v1663_v17 = vor.u32 %v2245_v16, %v1662_v15  ;;  %v2285_v2 = vld [vmem:[%s2646_s4 + $0x58] sm:$0xff]  ;;  %v2282_v9 = vld [vmem:[%s2646_s4 + $0x40] sm:$0xff]  ;;  %v1978_v10 = vld [vmem:[#allocation2 + $0x1f0] sm:$0xf] }
  0x3d   :  { %v2277_v3 = vld [vmem:[%s2646_s4 + $0x18] sm:$0xff]  ;;  %v2322_v12 = vld [vmem:[#allocation2 + $0x1f4] sm:$0xf]  ;;  %v2275_v16 = vld [vmem:[%s2646_s4 + $0x8] sm:$0xff] }
  0x3e   :  { %598 = vmatpush.bf16.msrb.mxu0 %v1691_v31  ;;  %v1849_v31 = vor.u32 %v2291_v29, %v1848_v28  ;;  %v1972_v23 = vld [vmem:[#allocation2 + $0x1e8] sm:$0xf0]  ;;  %v2303_v28 = vld [vmem:[#allocation2 + $0x154] sm:$0xf0]  ;;  %v2318_v36 = vld [vmem:[#allocation2 + $0x1d4] sm:$0xf] }
  0x3f   :  { %611 = vmatpush.bf16.msrb.mxu1 %v1755_v24  ;;  %v1655_v24 = vor.u32 %v2243_v22, %v1654_v21  ;;  %v2321_v21 = vld [vmem:[#allocation2 + $0x1e4] sm:$0xf0]  ;;  %v2320_v22 = vld [vmem:[#allocation2 + $0x1e4] sm:$0xf] }
  0x40   :  { %585 = vmatpush.bf16.msra.mxu3 %v1751_v20  ;;  %572 = vmatpush.bf16.msra.mxu2 %v1687_v30  ;;  %v1667_v20 = vor.u32 %v2244_v18, %v1664_v19  ;;  %v2290_v30 = vld [vmem:[%s2643_s1 + $0x14] sm:$0xf]  ;;  %v2305_v18 = vld [vmem:[#allocation2 + $0x164] sm:$0xf0]  ;;  %v1975_v25 = vor.u32 %v2320_v22, %v1972_v23  ;;  %v1932_v22 = vld [vmem:[#allocation2 + $0x198] sm:$0xf0] }
  0x41   :  { %v1858_v23 = vld [vmem:[#allocation2 + $0x100] sm:$0xf] }
  0x42   :  { %599 = vmatpush.bf16.msrb.mxu0 %v1683_v59  ;;  %v2307_v59 = vld [vmem:[#allocation2 + $0x174] sm:$0xf0] }
  0x43   :  { %612 = vmatpush.bf16.msrb.mxu1 %v1747_v34  ;;  %v799_v34 = vsel %vm80_vm0, %v1849_v31, 0  ;;  %v1916_v31 = vld [vmem:[#allocation2 + $0x178] sm:$0xf0] }
  0x44   :  { %586 = vmatpush.bf16.msra.mxu3 %v1743_v32  ;;  %573 = vmatpush.bf16.msra.mxu2 %v1679_v57  ;;  %v1850_v32 = vld [vmem:[%s2643_s1 + $0x18] sm:$0x30] }
  0x45   :  { %v1853_v33 = vor.u32 %v2290_v30, %v1850_v32  ;;  %v2306_v30 = vld [vmem:[#allocation2 + $0x174] sm:$0xf] }
  0x46   :  { %600 = vmatpush.bf16.msrb.mxu0 %v1675_v8  ;;  %v2283_v8 = vld [vmem:[%s2646_s4 + $0x48] sm:$0xff]  ;;  %v1919_v32 = vor.u32 %v2306_v30, %v1916_v31  ;;  %v1922_v30 = vld [vmem:[#allocation2 + $0x180] sm:$0xf] }
  0x47   :  { %613 = vmatpush.bf16.msrb.mxu1 %v1739_v42  ;;  %v802_v35 = vsel %vm80_vm0, %v1853_v33, 0  ;;  %v1962_v33 = vld [vmem:[#allocation2 + $0x1d0] sm:$0xf]  ;;  %v2309_v31 = vld [vmem:[#allocation2 + $0x184] sm:$0xf0] }
  0x48   :  { %587 = vmatpush.bf16.msra.mxu3 %v1735_v40  ;;  %574 = vmatpush.bf16.msra.mxu2 %v1671_v5  ;;  %v2281_v40 = vld [vmem:[%s2646_s4 + $0x38] sm:$0xff]  ;;  %v2284_v5 = vld [vmem:[%s2646_s4 + $0x50] sm:$0xff] }
  0x4a   :  { %601 = vmatpush.bf16.msrb.mxu0 %v1667_v20  ;;  %v1970_v20 = vld [vmem:[#allocation2 + $0x1e0] sm:$0xf] }
  0x4b   :  { %614 = vmatpush.bf16.msrb.mxu1 %v1731_v1 }
  0x4c   :  { %588 = vmatpush.bf16.msra.mxu3 %v1727_v63  ;;  %575 = vmatpush.bf16.msra.mxu2 %v1663_v17  ;;  %v1915_v63 = vor.u32 %v2307_v59, %v1914_v58  ;;  %v1906_v17 = vld [vmem:[#allocation2 + $0x160] sm:$0xf]  ;;  %v2315_v58 = vld [vmem:[#allocation2 + $0x1b4] sm:$0xf0]  ;;  %v2314_v59 = vld [vmem:[#allocation2 + $0x1b4] sm:$0xf] }
  0x4d   :  { %v1907_v19 = vor.u32 %v2305_v18, %v1906_v17  ;;  %v1930_v18 = vld [vmem:[#allocation2 + $0x190] sm:$0xf] }
  0x4e   :  { %602 = vmatpush.bf16.msrb.mxu0 %v1659_v26  ;;  %v1898_v26 = vld [vmem:[#allocation2 + $0x150] sm:$0xf] }
  0x4f   :  { %615 = vmatpush.bf16.msrb.mxu1 %v1723_v14  ;;  %v1980_v14 = vld [vmem:[#allocation2 + $0x1f8] sm:$0xf0]  ;;  %v1899_v29 = vor.u32 %v2303_v28, %v1898_v26  ;;  %v2296_v26 = vld [vmem:[#allocation2 + $0x124] sm:$0xf]  ;;  %v1876_v28 = vld [vmem:[#allocation2 + $0x128] sm:$0xf0] }
  0x50   :  { %589 = vmatpush.bf16.msra.mxu3 %v1719_v11  ;;  %576 = vmatpush.bf16.msra.mxu2 %v1655_v24  ;;  %v2323_v11 = vld [vmem:[#allocation2 + $0x1f4] sm:$0xf0]  ;;  %v1983_v15 = vor.u32 %v2322_v12, %v1980_v14  ;;  %v2274_v24 = vld [vmem:[%s2646_s4] sm:$0xff]  ;;  %v1866_v12 = vld [vmem:[#allocation2 + $0x110] sm:$0xf] }
  0x51   :  { %v1979_v13 = vor.u32 %v2323_v11, %v1978_v10  ;;  %v1940_v10 = vld [vmem:[#allocation2 + $0x1a8] sm:$0xf0] }
  0x96   :  { %v96_v44 = vpop.f32.mrf.mxu2 }
  0x97   :  { %v97_v45 = vadd.f32 %v96_v44, %v66_v41  ;;  %v2288_v44 = vld [vmem:[%s2646_s4 + $0x70] sm:$0xff] }
  0x98   :  { %v109_v46 = vpop.f32.mrf.mxu3 }
  0x99   :  { %v110_v47 = vadd.f32 %v109_v46, %v67_v43  ;;  %v113_v48 = vmax.f32 %v97_v45, 0.0  ;;  %v2280_v45 = vld [vmem:[%s2646_s4 + $0x30] sm:$0xff] }
  0x9b   :  { %v114_v49 = vmax.f32 %v110_v47, 0.0  ;;  %v115_v50 = vpack.c.bf16 %v113_v48, %v113_v48  ;;  %v153_v47 = vperm.slane %v149_v38, 1 }
  0x9d   :  { %v116_v51 = vpack.c.bf16 %v114_v49, %v114_v49  ;;  %323 = vmatmul.bf16.vlgmr.msrb.gmra.mxu2 %v115_v50  ;;  %349 = vmatmul.bf16.vlgmr.msra.gmra.mxu0 %v115_v50  ;;  %v2287_v50 = vld [vmem:[%s2646_s4 + $0x68] sm:$0xff] }
  0x9e   :  { %v98_v52 = vpop.f32.mrf.mxu2  ;;  %811 = vmatpush.bf16.msra.mxu0 %v799_v34  ;;  %754 = vmatpush.bf16.msrb.mxu2 %v2281_v40  ;;  %v2319_v34 = vld [vmem:[#allocation2 + $0x1d4] sm:$0xf0]  ;;  %v2301_v40 = vld [vmem:[#allocation2 + $0x144] sm:$0xf0] }
  0x9f   :  { %336 = vmatmul.bf16.vlgmr.msrb.gmra.mxu3 %v116_v51  ;;  %362 = vmatmul.bf16.vlgmr.msra.gmra.mxu1 %v116_v51  ;;  %v2279_v51 = vld [vmem:[%s2646_s4 + $0x28] sm:$0xff] }
  0xa0   :  { %v111_v53 = vpop.f32.mrf.mxu3  ;;  %824 = vmatpush.bf16.msra.mxu1 %v802_v35  ;;  %767 = vmatpush.bf16.msrb.mxu3 %v2289_v39  ;;  %v1963_v35 = vor.u32 %v2319_v34, %v1962_v33  ;;  %v1890_v39 = vld [vmem:[#allocation2 + $0x140] sm:$0xf]  ;;  %v1923_v33 = vor.u32 %v2309_v31, %v1922_v30  ;;  %v1924_v34 = vld [vmem:[#allocation2 + $0x188] sm:$0xf0] }
  0xa2   :  { %755 = vmatpush.bf16.msrb.mxu2 %v2280_v45  ;;  %v1954_v45 = vld [vmem:[#allocation2 + $0x1c0] sm:$0xf] }
  0xa4   :  { %768 = vmatpush.bf16.msrb.mxu3 %v2288_v44 }
  0xa6   :  { %756 = vmatpush.bf16.msrb.mxu2 %v2279_v51  ;;  %v1882_v51 = vld [vmem:[#allocation2 + $0x130] sm:$0xf] }
  0xa8   :  { %769 = vmatpush.bf16.msrb.mxu3 %v2287_v50 }
  0xaa   :  { %757 = vmatpush.bf16.msrb.mxu2 %v2278_v61  ;;  %v1948_v61 = vld [vmem:[#allocation2 + $0x1b8] sm:$0xf0] }
  0xac   :  { %770 = vmatpush.bf16.msrb.mxu3 %v2286_v60 }
  0xae   :  { %758 = vmatpush.bf16.msrb.mxu2 %v2277_v3  ;;  %v1892_v3 = vld [vmem:[#allocation2 + $0x148] sm:$0xf0] }
  0xb0   :  { %771 = vmatpush.bf16.msrb.mxu3 %v2285_v2 }
  0xb2   :  { %759 = vmatpush.bf16.msrb.mxu2 %v2276_v6  ;;  %v2313_v6 = vld [vmem:[#allocation2 + $0x1a4] sm:$0xf0] }
  0xb4   :  { %772 = vmatpush.bf16.msrb.mxu3 %v2284_v5  ;;  %v1938_v5 = vld [vmem:[#allocation2 + $0x1a0] sm:$0xf] }
  0xb6   :  { %760 = vmatpush.bf16.msrb.mxu2 %v2275_v16  ;;  %v1884_v16 = vld [vmem:[#allocation2 + $0x138] sm:$0xf0] }
  0xb8   :  { %773 = vmatpush.bf16.msrb.mxu3 %v2283_v8  ;;  %v2312_v8 = vld [vmem:[#allocation2 + $0x1a4] sm:$0xf] }
  0xb9   :  { %v1943_v11 = vor.u32 %v2312_v8, %v1940_v10 }
  0xba   :  { %761 = vmatpush.bf16.msrb.mxu2 %v2274_v24  ;;  %v2293_v24 = vld [vmem:[#allocation2 + $0x104] sm:$0xf0] }
  0xbc   :  { %774 = vmatpush.bf16.msrb.mxu3 %v2282_v9  ;;  %v1939_v9 = vor.u32 %v2313_v6, %v1938_v5  ;;  %v2333_v5 = vld [vmem:[#allocation4 + $0x144] sm:$0xf0] }
 0x11a   :  { %v350_v41 = vpop.f32.mrf.mxu0 }
 0x11b   :  { %v351_v42 = vadd.f32 %v350_v41, %v154_v37  ;;  %v1964_v37 = vld [vmem:[#allocation2 + $0x1d8] sm:$0xf0]  ;;  %v2304_v41 = vld [vmem:[#allocation2 + $0x164] sm:$0xf] }
 0x11c   :  { %v363_v43 = vpop.f32.mrf.mxu1  ;;  %v1967_v38 = vor.u32 %v2318_v36, %v1964_v37  ;;  %v2294_v36 = vld [vmem:[#allocation2 + $0x114] sm:$0xf]  ;;  %v1868_v37 = vld [vmem:[#allocation2 + $0x118] sm:$0xf0] }
 0x11d   :  { %v364_v46 = vadd.f32 %v363_v43, %v351_v42  ;;  %v1891_v42 = vor.u32 %v2301_v40, %v1890_v39  ;;  %v1908_v43 = vld [vmem:[#allocation2 + $0x168] sm:$0xf0]  ;;  %v404_v39 = vperm.slane %v2501_v27, 6  ;;  %v2292_v40 = vld [vmem:[#allocation2 + $0x104] sm:$0xf] }
 0x11e   :  { %v1911_v44 = vor.u32 %v2304_v41, %v1908_v43  ;;  %v1860_v41 = vld [vmem:[#allocation2 + $0x108] sm:$0xf0] }
 0x11f   :  { %v368_v48 = vmax.f32 %v364_v46, 0.0  ;;  %v2317_v46 = vld [vmem:[#allocation2 + $0x1c4] sm:$0xf0]  ;;  %v1863_v43 = vor.u32 %v2292_v40, %v1860_v41  ;;  %v2354_v40 = vld [vmem:[#allocation4 + $0x1f4] sm:$0xf] }
 0x120   :  { %v324_v49 = vpop.f32.mrf.mxu2 }
 0x121   :  { %v370_v52 = vpack.c.bf16 %v368_v48, %v368_v48  ;;  %v325_v53 = vadd.f32 %v324_v49, %v153_v47  ;;  %v1955_v47 = vor.u32 %v2317_v46, %v1954_v45  ;;  %v2316_v48 = vld [vmem:[#allocation2 + $0x1c4] sm:$0xf]  ;;  %v1956_v49 = vld [vmem:[#allocation2 + $0x1c8] sm:$0xf0]  ;;  %v403_v45 = vperm.slane %v2501_v27, 2 }
 0x122   :  { %v337_v54 = vpop.f32.mrf.mxu3  ;;  %v352_v55 = vpop.f32.mrf.mxu0  ;;  %v1959_v50 = vor.u32 %v2316_v48, %v1956_v49  ;;  %v2042_v46 = vld [vmem:[#allocation4 + $0x170] sm:$0xf] }
 0x123   :  { %v338_v56 = vadd.f32 %v337_v54, %v325_v53  ;;  %590 = vmatmul.bf16.vlgmr.msra.gmra.mxu3 %v370_v52  ;;  %616 = vmatmul.bf16.vlgmr.msrb.gmra.mxu1 %v370_v52  ;;  %v2299_v52 = vld [vmem:[#allocation2 + $0x134] sm:$0xf0]  ;;  %v2302_v54 = vld [vmem:[#allocation2 + $0x154] sm:$0xf]  ;;  %v1900_v55 = vld [vmem:[#allocation2 + $0x158] sm:$0xf0] }
 0x124   :  { %v365_v57 = vpop.f32.mrf.mxu1  ;;  %1046 = vmatpush.bf16.msrb.mxu1 %v1979_v13  ;;  %1072 = vmatpush.bf16.msra.mxu3 %v1983_v15  ;;  %v1883_v53 = vor.u32 %v2299_v52, %v1882_v51  ;;  %v2295_v13 = vld [vmem:[#allocation2 + $0x114] sm:$0xf0]  ;;  %v2298_v15 = vld [vmem:[#allocation2 + $0x134] sm:$0xf]  ;;  %v2034_v51 = vld [vmem:[#allocation4 + $0x160] sm:$0xf] }
 0x125   :  { %v367_v62 = vmax.f32 %v338_v56, 0.0  ;;  %v1903_v56 = vor.u32 %v2302_v54, %v1900_v55  ;;  %v1946_v57 = vld [vmem:[#allocation2 + $0x1b0] sm:$0xf]  ;;  %v1867_v14 = vor.u32 %v2295_v13, %v1866_v12  ;;  %v1887_v17 = vor.u32 %v2298_v15, %v1884_v16  ;;  %v2337_v52 = vld [vmem:[#allocation4 + $0x164] sm:$0xf0] }
 0x126   :  { %v1947_v60 = vor.u32 %v2315_v58, %v1946_v57  ;;  %v2578_v55 = vld [vmem:[%s2647_s5 + $0x8] sm:$0xff]  ;;  %v407_v58 = vperm.slane %v403_v45, 2  ;;  %v2044_v12 = vld [vmem:[#allocation4 + $0x178] sm:$0xf0]  ;;  %v2331_v45 = vld [vmem:[#allocation4 + $0x134] sm:$0xf0] }
 0x127   :  { %v369_v0 = vpack.c.bf16 %v367_v62, %v367_v62  ;;  %v1951_v62 = vor.u32 %v2314_v59, %v1948_v61  ;;  %v785_v59 = vperm.slane %v2578_v55, 4  ;;  %v2335_v61 = vld [vmem:[#allocation4 + $0x154] sm:$0xf0]  ;;  %v784_v10 = vperm.slane %v2578_v55, 0 }
 0x128   :  { %v326_v1 = vpop.f32.mrf.mxu2  ;;  %1073 = vmatpush.bf16.msra.mxu3 %v1975_v25  ;;  %v1859_v25 = vor.u32 %v2293_v24, %v1858_v23 }
 0x129   :  { %577 = vmatmul.bf16.vlgmr.msra.gmra.mxu2 %v369_v0  ;;  %603 = vmatmul.bf16.vlgmr.msrb.gmra.mxu0 %v369_v0  ;;  %v2297_v0 = vld [vmem:[#allocation2 + $0x124] sm:$0xf0]  ;;  %v2300_v1 = vld [vmem:[#allocation2 + $0x144] sm:$0xf] }
 0x12a   :  { %v339_v4 = vpop.f32.mrf.mxu3  ;;  %1033 = vmatpush.bf16.msrb.mxu0 %v1915_v63  ;;  %1059 = vmatpush.bf16.msra.mxu2 %v1919_v32  ;;  %v1874_v63 = vld [vmem:[#allocation2 + $0x120] sm:$0xf]  ;;  %v2308_v32 = vld [vmem:[#allocation2 + $0x184] sm:$0xf] }
 0x12b   :  { %v1875_v2 = vor.u32 %v2297_v0, %v1874_v63  ;;  %v1895_v4 = vor.u32 %v2300_v1, %v1892_v3  ;;  %v789_v3 = vperm.slane %v785_v59, 0  ;;  %v2328_v59 = vld [vmem:[#allocation4 + $0x124] sm:$0xf] }
 0x12c   :  { %1074 = vmatpush.bf16.msra.mxu3 %v1967_v38  ;;  %v1871_v38 = vor.u32 %v2294_v36, %v1868_v37 }
 0x12e   :  { %1034 = vmatpush.bf16.msrb.mxu0 %v1907_v19  ;;  %1060 = vmatpush.bf16.msra.mxu2 %v1911_v44  ;;  %v2311_v19 = vld [vmem:[#allocation2 + $0x194] sm:$0xf0]  ;;  %v408_v44 = vperm.slane %v404_v39, 2 }
 0x12f   :  { %v2355_v39 = vld [vmem:[#allocation4 + $0x1f4] sm:$0xf0] }
 0x130   :  { %1075 = vmatpush.bf16.msra.mxu3 %v1959_v50 }
 0x132   :  { %1035 = vmatpush.bf16.msrb.mxu0 %v1899_v29  ;;  %1061 = vmatpush.bf16.msra.mxu2 %v1903_v56  ;;  %v1879_v29 = vor.u32 %v2296_v26, %v1876_v28  ;;  %v2035_v56 = vor.u32 %v2337_v52, %v2034_v51  ;;  %v2334_v28 = vld [vmem:[#allocation4 + $0x154] sm:$0xf] }
 0x133   :  { %1855 = vmatmul.msk.bf16.vlgmr.msra.gmra.mxu1 %vm76_vm1, %v2490_v7 }
 0x134   :  { %1076 = vmatpush.bf16.msra.mxu3 %v1951_v62 }
 0x136   :  { %1036 = vmatpush.bf16.msrb.mxu0 %v1891_v42  ;;  %1062 = vmatpush.bf16.msra.mxu2 %v1895_v4  ;;  %v2018_v4 = vld [vmem:[#allocation4 + $0x140] sm:$0xf] }
 0x138   :  { %1077 = vmatpush.bf16.msra.mxu3 %v1943_v11  ;;  %v2338_v11 = vld [vmem:[#allocation4 + $0x174] sm:$0xf] }
 0x139   :  { %1854 = vmatmul.msk.bf16.vlgmr.msra.gmra.mxu0 %vm76_vm1, %v2490_v7  ;;  %v1971_v7 = vor.u32 %v2321_v21, %v1970_v20  ;;  %v1931_v20 = vor.u32 %v2311_v19, %v1930_v18  ;;  %v2310_v21 = vld [vmem:[#allocation2 + $0x194] sm:$0xf]  ;;  %v788_v19 = vperm.slane %v784_v10, 0  ;;  %v1996_v10 = vld [vmem:[#allocation4 + $0x118] sm:$0xf0] }
 0x13a   :  { %1037 = vmatpush.bf16.msrb.mxu0 %v1883_v53  ;;  %1063 = vmatpush.bf16.msra.mxu2 %v1887_v17  ;;  %v2047_v17 = vor.u32 %v2338_v11, %v2044_v12  ;;  %v2082_v12 = vld [vmem:[#allocation4 + $0x1c0] sm:$0xf] }
 0x13b   :  { %1047 = vmatpush.bf16.msrb.mxu1 %v1971_v7  ;;  %v1935_v7 = vor.u32 %v2310_v21, %v1932_v22  ;;  %v2336_v21 = vld [vmem:[#allocation4 + $0x164] sm:$0xf]  ;;  %v2036_v22 = vld [vmem:[#allocation4 + $0x168] sm:$0xf0] }
 0x13d   :  { %1078 = vmatpush.bf16.msra.mxu3 %v1935_v7 }
 0x13e   :  { %1038 = vmatpush.bf16.msrb.mxu0 %v1875_v2  ;;  %1064 = vmatpush.bf16.msra.mxu2 %v1879_v29  ;;  %v2028_v29 = vld [vmem:[#allocation4 + $0x158] sm:$0xf0] }
 0x13f   :  { %1048 = vmatpush.bf16.msrb.mxu1 %v1963_v35  ;;  %v1927_v35 = vor.u32 %v2308_v32, %v1924_v34  ;;  %v2031_v32 = vor.u32 %v2334_v28, %v2028_v29  ;;  %v2332_v34 = vld [vmem:[#allocation4 + $0x144] sm:$0xf]  ;;  %v2076_v28 = vld [vmem:[#allocation4 + $0x1b8] sm:$0xf0] }
 0x141   :  { %1079 = vmatpush.bf16.msra.mxu3 %v1927_v35  ;;  %v2020_v35 = vld [vmem:[#allocation4 + $0x148] sm:$0xf0] }
 0x142   :  { %1039 = vmatpush.bf16.msrb.mxu0 %v1867_v14  ;;  %1065 = vmatpush.bf16.msra.mxu2 %v1871_v38  ;;  %v2019_v14 = vor.u32 %v2333_v5, %v2018_v4  ;;  %v2023_v37 = vor.u32 %v2332_v34, %v2020_v35  ;;  %v2106_v38 = vld [vmem:[#allocation4 + $0x1f0] sm:$0xf]  ;;  %v2068_v34 = vld [vmem:[#allocation4 + $0x1a8] sm:$0xf0] }
 0x143   :  { %1049 = vmatpush.bf16.msrb.mxu1 %v1955_v47  ;;  %v2339_v47 = vld [vmem:[#allocation4 + $0x174] sm:$0xf0]  ;;  %v2107_v41 = vor.u32 %v2355_v39, %v2106_v38  ;;  %v1994_v5 = vld [vmem:[#allocation4 + $0x110] sm:$0xf]  ;;  %v2342_v38 = vld [vmem:[#allocation4 + $0x194] sm:$0xf] }
 0x144   :  { %v2043_v50 = vor.u32 %v2339_v47, %v2042_v46  ;;  %v2330_v46 = vld [vmem:[#allocation4 + $0x134] sm:$0xf] }
 0x146   :  { %1040 = vmatpush.bf16.msrb.mxu0 %v1859_v25  ;;  %1066 = vmatpush.bf16.msra.mxu2 %v1863_v43  ;;  %v2039_v25 = vor.u32 %v2336_v21, %v2036_v22  ;;  %v1988_v22 = vld [vmem:[#allocation4 + $0x108] sm:$0xf0] }
 0x147   :  { %1050 = vmatpush.bf16.msrb.mxu1 %v1947_v60  ;;  %v2026_v60 = vld [vmem:[#allocation4 + $0x150] sm:$0xf] }
 0x148   :  { %v2027_v0 = vor.u32 %v2335_v61, %v2026_v60  ;;  %v2004_v61 = vld [vmem:[#allocation4 + $0x128] sm:$0xf0] }
 0x14a   :  { %1288 = vmatpush.bf16.msra.mxu0 %v2043_v50  ;;  %v2353_v50 = vld [vmem:[#allocation4 + $0x1e4] sm:$0xf0] }
 0x14b   :  { %1051 = vmatpush.bf16.msrb.mxu1 %v1939_v9 }
 0x14e   :  { %1289 = vmatpush.bf16.msra.mxu0 %v2035_v56 }
 0x14f   :  { %1052 = vmatpush.bf16.msrb.mxu1 %v1931_v20 }
 0x152   :  { %1290 = vmatpush.bf16.msra.mxu0 %v2027_v0  ;;  %v2351_v0 = vld [vmem:[#allocation4 + $0x1d4] sm:$0xf0] }
 0x153   :  { %1053 = vmatpush.bf16.msrb.mxu1 %v1923_v33 }
 0x156   :  { %1291 = vmatpush.bf16.msra.mxu0 %v2019_v14  ;;  %v2348_v14 = vld [vmem:[#allocation4 + $0x1c4] sm:$0xf] }
 0x157   :  { %1301 = vmatpush.bf16.msra.mxu1 %v2107_v41 }
 0x1a0   :  { %v617_v42 = vpop.f32.mrf.mxu1 }
 0x1a6   :  { %v591_v48 = vpop.f32.mrf.mxu3  ;;  %v604_v49 = vpop.f32.mrf.mxu0 }
 0x1a7   :  { %v605_v53 = vadd.f32 %v604_v49, %v408_v44  ;;  %v2010_v44 = vld [vmem:[#allocation4 + $0x130] sm:$0xf]  ;;  %v2098_v49 = vld [vmem:[#allocation4 + $0x1e0] sm:$0xf] }
 0x1a8   :  { %v619_v54 = vpop.f32.mrf.mxu1  ;;  %v2011_v47 = vor.u32 %v2331_v45, %v2010_v44  ;;  %v2099_v52 = vor.u32 %v2353_v50, %v2098_v49  ;;  %v2340_v44 = vld [vmem:[#allocation4 + $0x184] sm:$0xf]  ;;  %v2371_v49 = vld [vmem:[%s2646_s4 + $0xf8] sm:$0xff] }
 0x1a9   :  { %v618_v57 = vadd.f32 %v617_v42, %v605_v53  ;;  %v2108_v42 = vld [vmem:[#allocation4 + $0x1f8] sm:$0xf0]  ;;  %v2352_v53 = vld [vmem:[#allocation4 + $0x1e4] sm:$0xf]  ;;  %v2100_v54 = vld [vmem:[#allocation4 + $0x1e8] sm:$0xf0] }
 0x1aa   :  { %v2111_v43 = vor.u32 %v2354_v40, %v2108_v42  ;;  %1292 = vmatpush.bf16.msra.mxu0 %v2011_v47  ;;  %v2103_v56 = vor.u32 %v2352_v53, %v2100_v54  ;;  %1302 = vmatpush.bf16.msra.mxu1 %v2099_v52  ;;  %v2060_v40 = vld [vmem:[#allocation4 + $0x198] sm:$0xf0]  ;;  %v2050_v42 = vld [vmem:[#allocation4 + $0x180] sm:$0xf]  ;;  %v2362_v52 = vld [vmem:[%s2646_s4 + $0xb0] sm:$0xff]  ;;  %v657_v54 = vperm.slane %v2501_v27, 3 }
 0x1ab   :  { %v622_v62 = vmax.f32 %v618_v57, 0.0  ;;  %v2002_v57 = vld [vmem:[#allocation4 + $0x120] sm:$0xf]  ;;  %v2063_v41 = vor.u32 %v2342_v38, %v2060_v40  ;;  %v868_v27 = vperm.slane %v2578_v55, 5 }
 0x1ac   :  { %v578_v63 = vpop.f32.mrf.mxu2 }
 0x1ad   :  { %v624_v1 = vpack.c.bf16 %v622_v62, %v622_v62  ;;  %v579_v2 = vadd.f32 %v578_v63, %v407_v58  ;;  %v2329_v58 = vld [vmem:[#allocation4 + $0x124] sm:$0xf0]  ;;  %v2007_v62 = vor.u32 %v2328_v59, %v2004_v61  ;;  %v2090_v63 = vld [vmem:[#allocation4 + $0x1d0] sm:$0xf] }
 0x1ae   :  { %v593_v6 = vpop.f32.mrf.mxu3  ;;  %v606_v8 = vpop.f32.mrf.mxu0  ;;  %v2003_v60 = vor.u32 %v2329_v58, %v2002_v57  ;;  %v2361_v57 = vld [vmem:[%s2646_s4 + $0xa8] sm:$0xff] }
 0x1af   :  { %v592_v9 = vadd.f32 %v591_v48, %v579_v2  ;;  %775 = vmatmul.bf16.vlgmr.msrb.gmra.mxu3 %v624_v1  ;;  %v2012_v48 = vld [vmem:[#allocation4 + $0x138] sm:$0xf0]  ;;  %v2091_v1 = vor.u32 %v2351_v0, %v2090_v63  ;;  %v2350_v2 = vld [vmem:[#allocation4 + $0x1d4] sm:$0xf]  ;;  %v2327_v6 = vld [vmem:[#allocation4 + $0x114] sm:$0xf0] }
 0x1b0   :  { %v826_v13 = vpop.f32.mrf.mxu1  ;;  %1327 = vmatpush.bf16.msrb.mxu3 %v2111_v43  ;;  %v2015_v51 = vor.u32 %v2330_v46, %v2012_v48  ;;  %1293 = vmatpush.bf16.msra.mxu0 %v2003_v60  ;;  %v1995_v8 = vor.u32 %v2327_v6, %v1994_v5  ;;  %v2341_v43 = vld [vmem:[#allocation4 + $0x184] sm:$0xf0]  ;;  %v2052_v46 = vld [vmem:[#allocation4 + $0x188] sm:$0xf0]  ;;  %v2363_v48 = vld [vmem:[%s2646_s4 + $0xb8] sm:$0xff] }
 0x1b1   :  { %v621_v15 = vmax.f32 %v592_v9, 0.0  ;;  %v827_v16 = vadd.f32 %v826_v13, %v789_v3  ;;  %v2092_v3 = vld [vmem:[#allocation4 + $0x1d8] sm:$0xf0]  ;;  %1303 = vmatpush.bf16.msra.mxu1 %v2091_v1  ;;  %v2326_v9 = vld [vmem:[#allocation4 + $0x114] sm:$0xf]  ;;  %v2051_v45 = vor.u32 %v2341_v43, %v2050_v42  ;;  %v2055_v47 = vor.u32 %v2340_v44, %v2052_v46 }
 0x1b2   :  { %v2095_v4 = vor.u32 %v2350_v2, %v2092_v3  ;;  %v1999_v11 = vor.u32 %v2326_v9, %v1996_v10  ;;  %v2349_v13 = vld [vmem:[#allocation4 + $0x1c4] sm:$0xf0] }
 0x1b3   :  { %v623_v18 = vpack.c.bf16 %v621_v15, %v621_v15  ;;  %v831_v20 = vmax.f32 %v827_v16, 0.0  ;;  %v2083_v15 = vor.u32 %v2349_v13, %v2082_v12  ;;  %v2084_v16 = vld [vmem:[#allocation4 + $0x1c8] sm:$0xf0] }
 0x1b4   :  { %v580_v7 = vpop.f32.mrf.mxu2  ;;  %1328 = vmatpush.bf16.msrb.mxu3 %v2103_v56  ;;  %1294 = vmatpush.bf16.msra.mxu0 %v1995_v8  ;;  %v872_v8 = vperm.slane %v868_v27, 1 }
 0x1b5   :  { %762 = vmatmul.bf16.vlgmr.msrb.gmra.mxu2 %v623_v18  ;;  %v833_v23 = vpack.c.bf16 %v831_v20, %v831_v20  ;;  %v1986_v18 = vld [vmem:[#allocation4 + $0x100] sm:$0xf]  ;;  %v2324_v20 = vld [vmem:[#allocation4 + $0x104] sm:$0xf]  ;;  %1304 = vmatpush.bf16.msra.mxu1 %v2083_v15 }
 0x1b6   :  { %v813_v24 = vpop.f32.mrf.mxu0  ;;  %1314 = vmatpush.bf16.msrb.mxu2 %v2047_v17  ;;  %v2087_v17 = vor.u32 %v2348_v14, %v2084_v16  ;;  %v1991_v7 = vor.u32 %v2324_v20, %v1988_v22  ;;  %v2370_v16 = vld [vmem:[%s2646_s4 + $0xf0] sm:$0xff]  ;;  %v2368_v20 = vld [vmem:[%s2646_s4 + $0xe0] sm:$0xff]  ;;  %v2367_v22 = vld [vmem:[%s2646_s4 + $0xd8] sm:$0xff] }
 0x1b7   :  { %v814_v26 = vadd.f32 %v813_v24, %v788_v19  ;;  %1054 = vmatmul.bf16.vlgmr.msrb.gmra.mxu1 %v833_v23  ;;  %v2325_v19 = vld [vmem:[#allocation4 + $0x104] sm:$0xf0]  ;;  %v2347_v24 = vld [vmem:[#allocation4 + $0x1b4] sm:$0xf0] }
 0x1b8   :  { %v828_v30 = vpop.f32.mrf.mxu1  ;;  %1329 = vmatpush.bf16.msrb.mxu3 %v2095_v4  ;;  %v1987_v21 = vor.u32 %v2325_v19, %v1986_v18  ;;  %v2369_v18 = vld [vmem:[%s2646_s4 + $0xe8] sm:$0xff]  ;;  %v2359_v19 = vld [vmem:[%s2646_s4 + $0x98] sm:$0xff] }
 0x1b9   :  { %v830_v31 = vmax.f32 %v814_v26, 0.0  ;;  %v2066_v30 = vld [vmem:[#allocation4 + $0x1a0] sm:$0xf] }
 0x1ba   :  { %1315 = vmatpush.bf16.msrb.mxu2 %v2039_v25  ;;  %v2346_v25 = vld [vmem:[#allocation4 + $0x1b4] sm:$0xf]  ;;  %1295 = vmatpush.bf16.msra.mxu0 %v1987_v21 }
 0x1bb   :  { %v832_v33 = vpack.c.bf16 %v830_v31, %v830_v31  ;;  %v2079_v29 = vor.u32 %v2346_v25, %v2076_v28  ;;  %v2345_v31 = vld [vmem:[#allocation4 + $0x1a4] sm:$0xf0]  ;;  %v2358_v21 = vld [vmem:[%s2646_s4 + $0x90] sm:$0xff] }
 0x1bc   :  { %1330 = vmatpush.bf16.msrb.mxu3 %v2087_v17  ;;  %v2360_v17 = vld [vmem:[%s2646_s4 + $0xa0] sm:$0xff]  ;;  %v2365_v25 = vld [vmem:[%s2646_s4 + $0xc8] sm:$0xff] }
 0x1bd   :  { %1041 = vmatmul.bf16.vlgmr.msrb.gmra.mxu0 %v832_v33 }
 0x1be   :  { %v815_v36 = vpop.f32.mrf.mxu0  ;;  %1316 = vmatpush.bf16.msrb.mxu2 %v2031_v32  ;;  %v2344_v32 = vld [vmem:[#allocation4 + $0x1a4] sm:$0xf]  ;;  %1474 = vmatpush.bf16.msrb.mxu0 %v2363_v48 }
 0x1bf   :  { %1080 = vmatmul.bf16.vlgmr.msra.gmra.mxu3 %v833_v23  ;;  %v2074_v23 = vld [vmem:[#allocation4 + $0x1b0] sm:$0xf]  ;;  %v2071_v35 = vor.u32 %v2344_v32, %v2068_v34 }
 0x1c0   :  { %v2075_v26 = vor.u32 %v2347_v24, %v2074_v23  ;;  %1331 = vmatpush.bf16.msrb.mxu3 %v2079_v29  ;;  %v2058_v36 = vld [vmem:[#allocation4 + $0x190] sm:$0xf]  ;;  %v2356_v24 = vld [vmem:[%s2646_s4 + $0x80] sm:$0xff]  ;;  %v1122_v29 = vperm.slane %v2578_v55, 2 }
 0x1c1   :  { %v2366_v23 = vld [vmem:[%s2646_s4 + $0xd0] sm:$0xff] }
 0x1c2   :  { %1317 = vmatpush.bf16.msrb.mxu2 %v2023_v37  ;;  %1305 = vmatpush.bf16.msra.mxu1 %v2075_v26  ;;  %v2343_v37 = vld [vmem:[#allocation4 + $0x194] sm:$0xf0]  ;;  %v2364_v26 = vld [vmem:[%s2646_s4 + $0xc0] sm:$0xff]  ;;  %v1126_v32 = vperm.slane %v1122_v29, 2 }
 0x1c3   :  { %v2059_v39 = vor.u32 %v2343_v37, %v2058_v36  ;;  %1475 = vmatpush.bf16.msrb.mxu0 %v2362_v52 }
 0x1c4   :  { %1332 = vmatpush.bf16.msrb.mxu3 %v2071_v35 }
 0x1c5   :  { %1067 = vmatmul.bf16.vlgmr.msra.gmra.mxu2 %v832_v33  ;;  %v2067_v33 = vor.u32 %v2345_v31, %v2066_v30 }
 0x1c6   :  { %1318 = vmatpush.bf16.msrb.mxu2 %v2015_v51  ;;  %v867_v51 = vperm.slane %v2578_v55, 1 }
 0x1c7   :  { %1306 = vmatpush.bf16.msra.mxu1 %v2067_v33  ;;  %1476 = vmatpush.bf16.msrb.mxu0 %v2361_v57  ;;  %v1123_v33 = vperm.slane %v2578_v55, 6 }
 0x1c8   :  { %1333 = vmatpush.bf16.msrb.mxu3 %v2063_v41  ;;  %v871_v56 = vperm.slane %v867_v51, 1 }
 0x1c9   :  { %v1127_v37 = vperm.slane %v1123_v33, 2 }
 0x1ca   :  { %1319 = vmatpush.bf16.msrb.mxu2 %v2007_v62 }
 0x1cb   :  { %1307 = vmatpush.bf16.msra.mxu1 %v2059_v39  ;;  %1477 = vmatpush.bf16.msrb.mxu0 %v2360_v17 }
 0x1cc   :  { %1334 = vmatpush.bf16.msrb.mxu3 %v2055_v47 }
 0x1ce   :  { %1320 = vmatpush.bf16.msrb.mxu2 %v1999_v11 }
 0x1cf   :  { %1308 = vmatpush.bf16.msra.mxu1 %v2051_v45  ;;  %1478 = vmatpush.bf16.msrb.mxu0 %v2359_v19 }
 0x1d2   :  { %1321 = vmatpush.bf16.msrb.mxu2 %v1991_v7  ;;  %v2357_v7 = vld [vmem:[%s2646_s4 + $0x88] sm:$0xff]  ;;  %s2433_s4 = smov 1  }
 0x1d3   :  { %1487 = vmatpush.bf16.msrb.mxu1 %v2371_v49  ;;  %1479 = vmatpush.bf16.msrb.mxu0 %v2358_v21  ;;  %v1377_v49 = vperm.slane %v2578_v55, 3 }
 0x1d7   :  { %1488 = vmatpush.bf16.msrb.mxu1 %v2370_v16  ;;  %1480 = vmatpush.bf16.msrb.mxu0 %v2357_v7 }
 0x1db   :  { %1489 = vmatpush.bf16.msrb.mxu1 %v2369_v18  ;;  %1481 = vmatpush.bf16.msrb.mxu0 %v2356_v24 }
 0x1df   :  { %1490 = vmatpush.bf16.msrb.mxu1 %v2368_v20 }
 0x1e3   :  { %1491 = vmatpush.bf16.msrb.mxu1 %v2367_v22 }
 0x1e7   :  { %1492 = vmatpush.bf16.msrb.mxu1 %v2366_v23 }
 0x1eb   :  { %1493 = vmatpush.bf16.msrb.mxu1 %v2365_v25 }
 0x1ef   :  { %1494 = vmatpush.bf16.msrb.mxu1 %v2364_v26 }
 0x232   :  { %v776_v50 = vpop.f32.mrf.mxu3 }
 0x234   :  { %v1055_v53 = vpop.f32.mrf.mxu1 }
 0x238   :  { %v763_v58 = vpop.f32.mrf.mxu2 }
 0x239   :  { %v764_v59 = vadd.f32 %v763_v58, %v657_v54 }
 0x23a   :  { %v778_v60 = vpop.f32.mrf.mxu3  ;;  %v1042_v61 = vpop.f32.mrf.mxu0 }
 0x23b   :  { %v2596_v62 = vadd.f32 %v776_v50, %v764_v59  ;;  %v1043_v63 = vadd.f32 %v1042_v61, %v871_v56 }
 0x23c   :  { %v1057_v0 = vpop.f32.mrf.mxu1 }
 0x23d   :  { %v1056_v1 = vadd.f32 %v1055_v53, %v1043_v63 }
 0x23f   :  { %v1085_v2 = vmax.f32 %v1056_v1, 0.0 }
 0x240   :  { %v765_v3 = vpop.f32.mrf.mxu2 }
 0x241   :  { %v1087_v4 = vpack.c.bf16 %v1085_v2, %v1085_v2 }
 0x242   :  { %v1044_v5 = vpop.f32.mrf.mxu0  ;;  %v1081_v6 = vpop.f32.mrf.mxu3 }
 0x243   :  { %1296 = vmatmul.bf16.vlgmr.msra.gmra.mxu0 %v1087_v4  ;;  %1322 = vmatmul.bf16.vlgmr.msrb.gmra.mxu2 %v1087_v4 }
 0x248   :  { %v1068_v9 = vpop.f32.mrf.mxu2 }
 0x249   :  { %v1069_v10 = vadd.f32 %v1068_v9, %v872_v8 }
 0x24a   :  { %v1083_v11 = vpop.f32.mrf.mxu3 }
 0x24b   :  { %v1082_v12 = vadd.f32 %v1081_v6, %v1069_v10 }
 0x24d   :  { %v1086_v13 = vmax.f32 %v1082_v12, 0.0 }
 0x24f   :  { %v1088_v14 = vpack.c.bf16 %v1086_v13, %v1086_v13 }
 0x250   :  { %v1070_v15 = vpop.f32.mrf.mxu2 }
 0x251   :  { %1309 = vmatmul.bf16.vlgmr.msra.gmra.mxu1 %v1088_v14  ;;  %1335 = vmatmul.bf16.vlgmr.msrb.gmra.mxu3 %v1088_v14 }
 0x2c0   :  { %v1297_v28 = vpop.f32.mrf.mxu0 }
 0x2c1   :  { %v1298_v34 = vadd.f32 %v1297_v28, %v1126_v32 }
 0x2c6   :  { %v1323_v30 = vpop.f32.mrf.mxu2 }
 0x2c7   :  { %v1324_v40 = vadd.f32 %v1323_v30, %v1127_v37 }
 0x2c8   :  { %v1299_v31 = vpop.f32.mrf.mxu0 }
 0x2ce   :  { %v1310_v35 = vpop.f32.mrf.mxu1  ;;  %v1325_v36 = vpop.f32.mrf.mxu2 }
 0x2cf   :  { %v1311_v38 = vadd.f32 %v1310_v35, %v1298_v34 }
 0x2d1   :  { %v1340_v39 = vmax.f32 %v1311_v38, 0.0 }
 0x2d3   :  { %v1342_v41 = vpack.c.bf16 %v1340_v39, %v1340_v39 }
 0x2d4   :  { %v1336_v42 = vpop.f32.mrf.mxu3 }
 0x2d5   :  { %v1337_v43 = vadd.f32 %v1336_v42, %v1324_v40  ;;  %1482 = vmatmul.bf16.vlgmr.msrb.gmra.mxu0 %v1342_v41 }
 0x2d6   :  { %v1312_v44 = vpop.f32.mrf.mxu1 }
 0x2d7   :  { %v1341_v45 = vmax.f32 %v1337_v43, 0.0 }
 0x2d9   :  { %v1343_v46 = vpack.c.bf16 %v1341_v45, %v1341_v45 }
 0x2db   :  { %1495 = vmatmul.bf16.vlgmr.msrb.gmra.mxu1 %v1343_v46 }
 0x2dc   :  { %v1338_v47 = vpop.f32.mrf.mxu3 }
 0x352   :  { %v1483_v48 = vpop.f32.mrf.mxu0 }
 0x353   :  { %v1484_v50 = vadd.f32 %v1483_v48, %v1377_v49 }
 0x358   :  { %v1496_v51 = vpop.f32.mrf.mxu1 }
 0x359   :  { %v1497_v52 = vadd.f32 %v1496_v51, %v1484_v50 }
 0x35a   :  { %v1485_v53 = vpop.f32.mrf.mxu0 }
 0x35b   :  { %1501 = vrot.lane.b32.xlu0 %v1497_v52, %s2433_s4 }
 0x360   :  { %v1498_v54 = vpop.f32.mrf.mxu1 }
 0x3cd   :  { %v1502_v56 = vpop.permute.xlu0 %1501 }
 0x3ce   :  { %v1505_v57 = vsel %vm1504_vm2, %v2596_v62, %v1502_v56 }
 0x3cf   :  { %1507 = vst.msk [vmem:[%s2648_s6] sm:$0xff] %vm1506_vm3, %v1505_v57 }
 0x3d0   :  { %1512 = vsyncpa [#allocation3], 1 }
 0x3d1   :  { %1513 = vsyncpa [#allocation5], 1 }

</bundles_post_ra>
